<compile_context>
chip_gen: v7x
topology: tpu7x:2x2x1
jax: 0.10.0
libtpu: 0.0.40
codegen_flags: <defaults>
</compile_context>

<pallas_src>
import functools

import numpy as np
import jax
import jax.numpy as jnp
from jax import lax
from jax.experimental import pallas as pl
from jax.experimental.pallas import tpu as pltpu


def _round_up(x, m):
    return (x + m - 1) // m * m


# ------------------- tiled bf16 matmul (MXU, f32 accumulate) -----------------

def _matmul_acc_kernel(a_ref, b_ref, o_ref, acc_ref):
    @pl.when(pl.program_id(2) == 0)
    def _():
        acc_ref[...] = jnp.zeros_like(acc_ref)

    acc_ref[...] += jnp.dot(a_ref[...], b_ref[...],
                            preferred_element_type=jnp.float32)

    @pl.when(pl.program_id(2) == pl.num_programs(2) - 1)
    def _():
        o_ref[...] = acc_ref[...].astype(o_ref.dtype)


def _matmul_1k_kernel(a_ref, b_ref, o_ref):
    # Single reduction step: no accumulator scratch, no init/finalize branches.
    o_ref[...] = jnp.dot(a_ref[...], b_ref[...],
                         preferred_element_type=jnp.float32).astype(o_ref.dtype)


def matmul(a, b, *, tm=256, tk=512, tn=256, out_dtype=jnp.float32):
    """[M,K]@[K,N] -> out_dtype [M,N]. bf16 operands on the MXU, f32 accumulate.
    (8,128)-aligned tiles sized to fit v7x's 64 MiB VMEM as well."""
    M, K = a.shape
    K2, N = b.shape
    assert K == K2
    Mp, Kp, Np = _round_up(M, 8), _round_up(K, 128), _round_up(N, 128)
    tm, tk, tn = min(tm, Mp), min(tk, Kp), min(tn, Np)
    Mp, Kp, Np = _round_up(Mp, tm), _round_up(Kp, tk), _round_up(Np, tn)
    a_p = a.astype(jnp.bfloat16)
    b_p = b.astype(jnp.bfloat16)
    if (Mp, Kp) != (M, K):
        a_p = jnp.pad(a_p, ((0, Mp - M), (0, Kp - K)))
    if (Kp, Np) != (K, N):
        b_p = jnp.pad(b_p, ((0, Kp - K), (0, Np - N)))

    if Kp // tk == 1:
        out = pl.pallas_call(
            _matmul_1k_kernel,
            out_shape=jax.ShapeDtypeStruct((Mp, Np), out_dtype),
            grid=(Mp // tm, Np // tn),
            in_specs=[pl.BlockSpec((tm, Kp), lambda i, j: (i, 0)),
                      pl.BlockSpec((Kp, tn), lambda i, j: (0, j))],
            out_specs=pl.BlockSpec((tm, tn), lambda i, j: (i, j)),
            compiler_params=pltpu.CompilerParams(
                dimension_semantics=("parallel", "parallel")),
        )(a_p, b_p)
    else:
        out = pl.pallas_call(
            _matmul_acc_kernel,
            out_shape=jax.ShapeDtypeStruct((Mp, Np), out_dtype),
            grid_spec=pltpu.PrefetchScalarGridSpec(
                num_scalar_prefetch=0,
                grid=(Mp // tm, Np // tn, Kp // tk),
                in_specs=[pl.BlockSpec((tm, tk), lambda i, j, k: (i, k)),
                          pl.BlockSpec((tk, tn), lambda i, j, k: (k, j))],
                out_specs=pl.BlockSpec((tm, tn), lambda i, j, k: (i, j)),
                scratch_shapes=[pltpu.VMEM((tm, tn), jnp.float32)]),
            compiler_params=pltpu.CompilerParams(
                dimension_semantics=("parallel", "parallel", "arbitrary")),
        )(a_p, b_p)

    if (Mp, Np) != (M, N):
        out = out[:M, :N]
    return out


# ---------------- separable bilinear resize (align_corners=True) -------------

@functools.lru_cache(maxsize=None)
def _interp_matrix_np(n_out, n_in):
    """Row-interpolation matrix for bilinear resize, align_corners=True.
    Built once on the host (numpy, no scatter), cached per (n_out, n_in)."""
    if n_out == 1:
        # TODO(synk): PyTorch's degenerate output-size-1 case; index 0 kept.
        m = np.zeros((1, n_in), np.float32)
        m[0, 0] = 1.0
        return m
    s = np.arange(n_out, dtype=np.float64) * (n_in - 1) / (n_out - 1)
    i0 = np.clip(np.floor(s).astype(np.int64), 0, n_in - 1)
    i1 = np.minimum(i0 + 1, n_in - 1)
    w1 = (s - i0).astype(np.float32)
    cols = np.arange(n_in)[None, :]
    m = ((cols == i0[:, None]) * (1.0 - w1)[:, None]
         + (cols == i1[:, None]) * w1[:, None]).astype(np.float32)
    return m


def _pick_group(bc, per_chan_bytes, *, max_group=16, min_steps=4,
                budget_bytes=6 << 20):
    """Largest divisor of bc that (a) keeps the per-step block under a VMEM
    byte budget, (b) stays <= max_group, and (c) leaves >= min_steps grid
    steps when possible (feeds both v7x TensorCores, hides DMA)."""
    cap = max(1, min(max_group, budget_bytes // max(per_chan_bytes, 1)))
    divs = [g for g in range(1, bc + 1) if bc % g == 0]
    ok = [g for g in divs if g <= cap]
    pref = [g for g in ok if bc // g >= min_steps]
    if pref:
        return max(pref)
    return max(ok) if ok else 1


def _bilinear_kernel(x_ref, ry_ref, rxt_ref, o_ref):
    # out[g] = Ry @ X[g] @ Rx^T.  Width pass as one 2-D MXU matmul over the
    # whole channel group; height pass reuses the shared 2-D ry (no broadcast,
    # no in-kernel transposes).
    G, Hin, Win = x_ref.shape
    ry = ry_ref[...]
    rxt = rxt_ref[...]
    if Hin % 8 == 0:
        # sublane-aligned merge of (G, Hin) -> one big-M matmul
        t = jnp.dot(x_ref[...].reshape(G * Hin, Win), rxt,
                    preferred_element_type=jnp.float32).astype(x_ref.dtype)
        for g in range(G):
            o_ref[g] = jnp.dot(ry, t[g * Hin:(g + 1) * Hin, :],
                               preferred_element_type=jnp.float32)
    else:
        for g in range(G):
            tg = jnp.dot(x_ref[g], rxt,
                         preferred_element_type=jnp.float32).astype(x_ref.dtype)
            o_ref[g] = jnp.dot(ry, tg, preferred_element_type=jnp.float32)


def bilinear_resize(x, out_hw, *, compute_dtype=jnp.float32, max_group=16):
    """F.interpolate(x, out_hw, mode='bilinear', align_corners=True), NCHW.
    compute_dtype=bf16 is used for the 0/1 mask path; the pred upsample stays
    f32 to remain bit-close to PyTorch's align_corners arithmetic."""
    B, C, Hin, Win = x.shape
    Hout, Wout = out_hw
    ry = jnp.asarray(_interp_matrix_np(Hout, Hin), dtype=compute_dtype)
    rxt = jnp.asarray(_interp_matrix_np(Wout, Win).T, dtype=compute_dtype)

    BC = B * C
    isz = jnp.dtype(compute_dtype).itemsize
    per_chan = Hin * Win * isz + Hin * Wout * 4 + Hout * Wout * 4
    G = _pick_group(BC, per_chan, max_group=max_group)   # divides BC -> no pad
    xf = x.reshape(BC, Hin, Win).astype(compute_dtype)

    out = pl.pallas_call(
        _bilinear_kernel,
        out_shape=jax.ShapeDtypeStruct((BC, Hout, Wout), jnp.float32),
        grid=(BC // G,),
        in_specs=[pl.BlockSpec((G, Hin, Win), lambda i: (i, 0, 0)),
                  pl.BlockSpec((Hout, Hin), lambda i: (0, 0)),
                  pl.BlockSpec((Win, Wout), lambda i: (0, 0))],
        out_specs=pl.BlockSpec((G, Hout, Wout), lambda i: (i, 0, 0)),
        compiler_params=pltpu.CompilerParams(
            dimension_semantics=("parallel",),
            vmem_limit_bytes=40 << 20),
    )(xf, ry, rxt)
    return out.reshape(B, C, Hout, Wout)


# ------------------ argmax over channels + background mask -------------------

def _argmax_bg_kernel(t_ref, o_ref):
    t = t_ref[...]                                            # [B, C, T] f32
    C = t.shape[1]
    cls = lax.broadcasted_iota(jnp.int32, t.shape, 1)
    m = jnp.max(t, axis=1, keepdims=True)
    first_max = jnp.min(jnp.where(t == m, cls, C), axis=1)    # first maximal idx
    s = jnp.sum(t, axis=1)
    o_ref[...] = jnp.where(s == 0.0, 255, first_max).astype(jnp.int32)


def argmax_with_background(targets, *, tile=8192):
    """torch.argmax(targets, 1); pixels where targets.sum(1)==0 -> 255 (int32).
    Spatial dims flattened onto the lane axis, large lane-dense tiles."""
    B, C, H, W = targets.shape
    HW = H * W
    HWp = _round_up(HW, 128)
    T = min(tile, HWp)
    HWp = _round_up(HWp, T)
    t = targets.astype(jnp.float32).reshape(B, C, HW)
    if HWp != HW:
        t = jnp.pad(t, ((0, 0), (0, 0), (0, HWp - HW)))
    out = pl.pallas_call(
        _argmax_bg_kernel,
        out_shape=jax.ShapeDtypeStruct((B, HWp), jnp.int32),
        grid=(HWp // T,),
        in_specs=[pl.BlockSpec((B, C, T), lambda j: (0, 0, j))],
        out_specs=pl.BlockSpec((B, T), lambda j: (0, j)),
        compiler_params=pltpu.CompilerParams(dimension_semantics=("parallel",)),
    )(t)
    if HWp != HW:
        out = out[:, :HW]
    return out.reshape(B, H, W)


# --------------------- fused prototype-matching "decoder" --------------------

def _decoder_kernel(qt_ref, rf_ref, md_ref, o_ref, proto_ref, *, inv_scale):
    # grid = (batch, shot); shot is the reduction axis, proto accumulates in
    # VMEM scratch.  alpha and 1/shot are folded into the per-shot denominator
    # (inv_scale = shot / alpha) and the divide runs on the EUP.
    s = pl.program_id(1)

    @pl.when(s == 0)
    def _():
        proto_ref[...] = jnp.zeros_like(proto_ref)

    md = md_ref[0, 0]                                         # [10, N] f32
    num = jnp.dot(md.astype(jnp.bfloat16), rf_ref[0, 0],
                  preferred_element_type=jnp.float32)         # [10, D]
    den = jnp.sum(md, axis=-1, keepdims=True) + 1e-6          # [10, 1]
    proto_ref[...] += num * pl.reciprocal(den * inv_scale, approx=True)

    @pl.when(s == pl.num_programs(1) - 1)
    def _():
        # logits in the transposed, lane-dense layout [classes, patches];
        # plain [10,D]@[D,N] (q pre-transposed in the wrapper -> no XLU xpose).
        o_ref[0] = jnp.dot(proto_ref[...].astype(jnp.bfloat16), qt_ref[0],
                           preferred_element_type=jnp.float32)


def decode_protos(q_feat, ref_feat, mask_ds, alpha):
    """Fused decoder stand-in: per-shot mask-weighted prototypes (bf16 MXU,
    f32 accumulate) + mean-over-shot + similarity logits + alpha, in ONE
    pallas_call over (batch, shot); output [b, 10, N]."""
    b, N, D = q_feat.shape
    _, shot, _, _ = ref_feat.shape
    ncls = mask_ds.shape[2]
    q_t = jnp.swapaxes(q_feat, 1, 2)                          # [b, D, N] bf16
    kernel = functools.partial(_decoder_kernel,
                               inv_scale=float(shot) / float(alpha))
    return pl.pallas_call(
        kernel,
        out_shape=jax.ShapeDtypeStruct((b, ncls, N), jnp.float32),
        grid_spec=pltpu.PrefetchScalarGridSpec(
            num_scalar_prefetch=0,
            grid=(b, shot),
            in_specs=[pl.BlockSpec((1, D, N), lambda i, s: (i, 0, 0)),
                      pl.BlockSpec((1, 1, N, D), lambda i, s: (i, s, 0, 0)),
                      pl.BlockSpec((1, 1, ncls, N), lambda i, s: (i, s, 0, 0))],
            out_specs=pl.BlockSpec((1, ncls, N), lambda i, s: (i, 0, 0)),
            scratch_shapes=[pltpu.VMEM((ncls, D), jnp.float32)]),
        compiler_params=pltpu.CompilerParams(
            dimension_semantics=("parallel", "arbitrary")),
    )(q_t, ref_feat, mask_ds)


# ------------------------------- model glue ----------------------------------

def patch_embed(images, w_embed, patch):
    """Backbone stand-in: non-overlapping patch flatten + linear projection.
    bf16 before the 6-D transpose and bf16 output -> half the HBM traffic."""
    B, C, H, W = images.shape
    Hf, Wf = H // patch, W // patch
    x = images.astype(jnp.bfloat16).reshape(B, C, Hf, patch, Wf, patch)
    x = x.transpose(0, 2, 4, 1, 3, 5).reshape(B * Hf * Wf, C * patch * patch)
    feats = matmul(x, w_embed.astype(jnp.bfloat16), out_dtype=jnp.bfloat16)
    return feats.reshape(B, Hf * Wf, -1), (Hf, Wf)


def eicseg_forward(images, targets, ref_images, ref_masks, params,
                   mode="test", alpha=1.0, patch=4):
    b, shot, c, h, w = ref_images.shape

    # TODO(synk): DINO get_intermediate_layers(.,3) pretrained backbone not
    # reproducible in-script; patch-embed matmul stand-in used instead.
    q_feat, (Hf, Wf) = patch_embed(images, params["w_embed"], patch)
    ref_feat, _ = patch_embed(ref_images.reshape(-1, c, h, w),
                              params["w_embed"], patch)
    N = Hf * Wf
    D = q_feat.shape[-1]

    # TODO(synk): SAM vit_b image_encoder (frozen, pretrained) has no in-script
    # equivalent; its 1024x1024 bilinear input resize is dead work without the
    # encoder and is therefore omitted.

    # Ref-mask downsampling to the patch grid (bf16 operands, f32 accumulate;
    # masks are 0/1 so drift is negligible).
    ref_m = ref_masks.reshape(b * shot, 10, h, w)
    mask_ds = bilinear_resize(ref_m, (Hf, Wf),
                              compute_dtype=jnp.bfloat16).reshape(b, shot, 10, N)

    # TODO(synk): EICdecoder not reproducible; fused prototype-matching decoder
    # stand-in (bf16 MXU matmuls, f32 accumulate, norm + mean + alpha fused).
    logits_t = decode_protos(q_feat, ref_feat.reshape(b, shot, N, D),
                             mask_ds, alpha)                  # [b, 10, N]
    pred_mask = logits_t.reshape(b, 10, Hf, Wf)

    # pred = F.interpolate(predictions_mask, targets.shape[-2:], bilinear, AC=True)
    Ht, Wt = targets.shape[-2], targets.shape[-1]
    pred = bilinear_resize(pred_mask, (Ht, Wt))               # f32, bit-close

    # targets_1 = argmax(targets, 1); background (sum==0) -> 255
    targets_1 = argmax_with_background(targets)

    if mode == "train":
        # TODO(synk): FocalDiceloss_IoULoss external criterion not available;
        # the per-class loss accumulation loop is not reproduced.
        return pred, targets_1
    return pred, targets_1


# --------------------------------- driver ------------------------------------

if __name__ == "__main__":
    key = jax.random.PRNGKey(0)
    k1, k2, k3, k4, k5 = jax.random.split(key, 5)

    B, C, H, W = 2, 3, 16, 16       # query images
    shot = 1
    Ht, Wt = 32, 32                 # target resolution
    D = 32                          # embed dim (small stand-in for 512)
    patch = 4

    images = jax.random.normal(k1, (B, C, H, W), jnp.float32)
    targets = (jax.random.uniform(k2, (B, 10, Ht, Wt)) > 0.7).astype(jnp.float32)
    ref_images = jax.random.normal(k3, (B, shot, C, H, W), jnp.float32)
    ref_masks = (jax.random.uniform(k4, (B, shot, 10, H, W)) > 0.5).astype(jnp.float32)

    params = {
        "w_embed": jax.random.normal(k5, (C * patch * patch, D), jnp.float32) * 0.02,
    }

    pred, targets_1 = eicseg_forward(images, targets, ref_images, ref_masks,
                                     params, mode="test", alpha=1.0, patch=patch)
    jax.block_until_ready((pred, targets_1))
    assert pred.shape == (B, 10, Ht, Wt)
    assert targets_1.shape == (B, Ht, Wt)
    print("KERNEL_OK")
</pallas_src>

<mosaic_0001>
module attributes {stable_mosaic.version = 11 : i64} {
  func.func @_matmul_1k_kernel(%arg0: i32, %arg1: i32, %arg2: memref<32x128xbf16, #tpu.memory_space<vmem>>, %arg3: memref<128x128xbf16, #tpu.memory_space<vmem>>, %arg4: memref<32x128xbf16, #tpu.memory_space<vmem>>) attributes {dimension_semantics = [#tpu.dimension_semantics<parallel>, #tpu.dimension_semantics<parallel>], iteration_bounds = array<i64: 1, 1>, scalar_prefetch = 0 : i64, scratch_operands = 0 : i64, tpu.core_type = #tpu.core_type<tc>, window_params = [{transform_indices = @transform_0, window_bounds = array<i64: 32, 128>}, {transform_indices = @transform_1, window_bounds = array<i64: 128, 128>}, {transform_indices = @transform_2, window_bounds = array<i64: 32, 128>}]} {
    %c0 = arith.constant 0 : index
    %c0_0 = arith.constant 0 : index
    %0 = vector.load %arg2[%c0, %c0_0] : memref<32x128xbf16, #tpu.memory_space<vmem>>, vector<32x128xbf16>
    %c0_1 = arith.constant 0 : index
    %c0_2 = arith.constant 0 : index
    %1 = vector.load %arg3[%c0_1, %c0_2] : memref<128x128xbf16, #tpu.memory_space<vmem>>, vector<128x128xbf16>
    %cst = arith.constant dense<0.000000e+00> : vector<32x128xf32>
    %2 = tpu.matmul %0, %1, %cst {dimension_numbers = #tpu.dot_dimension_numbers<[1], [0], [0], [1], [0, 0, 1, 1], [], []>} : vector<32x128xbf16>, vector<128x128xbf16>, vector<32x128xf32> -> vector<32x128xf32>
    %3 = arith.truncf %2 : vector<32x128xf32> to vector<32x128xbf16>
    %c0_3 = arith.constant 0 : index
    %c0_4 = arith.constant 0 : index
    %4 = vector.load %arg4[%c0_3, %c0_4] : memref<32x128xbf16, #tpu.memory_space<vmem>>, vector<32x128xbf16>
    tpu.vector_store %arg4[%c0_3, %c0_4], %3 {strides = array<i32>} : memref<32x128xbf16, #tpu.memory_space<vmem>>, vector<32x128xbf16>,
    return
  }
  func.func @transform_0(%arg0: i32, %arg1: i32) -> (i32, i32) {
    %c0_i32 = arith.constant 0 : i32
    %c0_i32_0 = arith.constant 0 : i32
    return %arg0, %c0_i32 : i32, i32
  }
  func.func @transform_1(%arg0: i32, %arg1: i32) -> (i32, i32) {
    %c0_i32 = arith.constant 0 : i32
    %c0_i32_0 = arith.constant 0 : i32
    return %c0_i32, %arg1 : i32, i32
  }
  func.func @transform_2(%arg0: i32, %arg1: i32) -> (i32, i32) {
    %c0_i32 = arith.constant 0 : i32
    return %arg0, %arg1 : i32, i32
  }
}

</mosaic_0001>

<bundles_post_ra>
// kernel: tpu_custom_call.1
= control target key start
LH: loop header
LB: loop body
LE: loop exit
PB: predicated region body
PF: predicated region fallthrough
CT: control target
= control target key end

     0   :  { %7 = vsyncpa [#allocation3], 0  ;;  %s419_s0 = inlined_call_operand.hbm [shape: bf16[32,128], index: 0, kind: input, shape index: {}]   ;;  %s420_s1 = inlined_call_operand.hbm [shape: bf16[128,128], index: 1, kind: input, shape index: {}]   ;;  %s421_s2 = inlined_call_operand.hbm [shape: bf16[32,128], index: 2, kind: output, shape index: {}]  }
   0x1   :  { %8 = vsyncpa [#allocation6], 0 }
   0x2   :  { %9 = vsyncpa [#allocation4], 0  ;;  %s354_s9 = smov [#allocation2]   ;;  %s282_s13 = scalar_lea.hbm %s419_s0, 256 }
   0x3   :  { %s15_s10 = sshll.u32 %s354_s9, 4  ;;  %p283_p0 = scmp.ne.s32.totalorder %s419_s0, %s282_s13  ;;  %s16_s10 = int_to_ptr.vmem [resolvable:$true] %s15_s10 }
   0x4   :  { %p286_p1 = scmp.lt.u32.totalorder %s282_s13, %s419_s0 }
   0x6   :  { %p288_p2 = pnand %p286_p1, %p283_p0 }
   0x8   :  { %291 = shalt.err (!%p288_p2)
}
   0x9   :  { %s292_s18 = scalar_lea.vmem %s16_s10, 256  ;;  %p297_p4 = scmp.lt.s32.totalorder %s16_s10, %s16_s10 }
   0xa   :  { %p293_p3 = scmp.ne.s32.totalorder %s16_s10, %s292_s18  ;;  %p298_p5 = scmp.lt.s32.totalorder %s292_s18, %s292_s18 }
   0xc   :  { %p299_p6 = por %p298_p5, %p297_p4 }
   0xe   :  { %p300_p7 = pnand %p299_p6, %p293_p3 }
  0x10   :  { %303 = shalt.err (!%p300_p7)
}
  0x11   :  { %s355_s19 = smov 64   ;;  %s356_s20 = smov 4  }
  0x12   :  { %21 = dma.hbm_to_vmem [thread:$0]  %s419_s0, 256, %s16_s10, [#allocation3], %s355_s19, %s355_s19, %s356_s20  }
  0x13   :  { %s357_s23 = smov [#allocation5]   ;;  %s304_s27 = scalar_lea.hbm %s420_s1, 1024 }
  0x14   :  { %s27_s24 = sshll.u32 %s357_s23, 4  ;;  %p305_p8 = scmp.ne.s32.totalorder %s420_s1, %s304_s27  ;;  %s28_s24 = int_to_ptr.vmem [resolvable:$true] %s27_s24 }
  0x15   :  { %p308_p9 = scmp.lt.u32.totalorder %s304_s27, %s420_s1 }
  0x17   :  { %p310_p10 = pnand %p308_p9, %p305_p8 }
  0x19   :  { %313 = shalt.err (!%p310_p10)
}
  0x1a   :  { %s314_s4 = scalar_lea.vmem %s28_s24, 1024  ;;  %p319_p12 = scmp.lt.s32.totalorder %s28_s24, %s28_s24 }
  0x1b   :  { %p315_p11 = scmp.ne.s32.totalorder %s28_s24, %s314_s4  ;;  %p320_p13 = scmp.lt.s32.totalorder %s314_s4, %s314_s4 }
  0x1d   :  { %p321_p0 = por %p320_p13, %p319_p12 }
  0x1f   :  { %p322_p1 = pnand %p321_p0, %p315_p11 }
  0x21   :  { %325 = shalt.err (!%p322_p1)
}
  0x22   :  { %33 = dma.hbm_to_vmem [thread:$0]  %s420_s1, 1024, %s28_s24, [#allocation6], %s355_s19, %s355_s19, %s356_s20  }
  0x23   :  { %348 = dma.done.wait [#allocation3], 256  }
  0x24   :  { %349 = vsyncadd [#allocation3], 4294967040 }
  0x25   :  { %350 = dma.done.wait [#allocation6], 1024  }
  0x26   :  { %351 = vsyncadd [#allocation6], 4294966272  ;;  %v272_v0 = vld [vmem:[#allocation5] sm:$0xff]   ;;  %v273_v1 = vld [vmem:[#allocation5 + $0x8] sm:$0xff]   ;;  %s358_s1 = smov [#allocation7]  }
  0x27   :  { %247 = vmatprep.subr.bf16.mxu0 %v272_v0  ;;  %v274_v2 = vld [vmem:[#allocation5 + $0x10] sm:$0xff]   ;;  %v275_v3 = vld [vmem:[#allocation5 + $0x18] sm:$0xff]   ;;  %v276_v5 = vld [vmem:[#allocation5 + $0x20] sm:$0xff]   ;;  %s195_s6 = sshll.u32 %s358_s1, 4  ;;  %s196_s6 = int_to_ptr.vmem [resolvable:$true] %s195_s6 }
  0x28   :  { %248 = vmatpush3.bf16.msra.mxu0 %v272_v0  ;;  %v280_v4 = vld [vmem:[#allocation2] sm:$0xff]   ;;  %v277_v6 = vld [vmem:[#allocation5 + $0x28] sm:$0xff]   ;;  %v279_v8 = vld [vmem:[#allocation5 + $0x38] sm:$0xff]   ;;  %s326_s7 = scalar_lea.vmem %s196_s6, 256  ;;  %p331_p3 = scmp.lt.s32.totalorder %s196_s6, %s196_s6 }
  0x29   :  { %249 = vmatprep.subr.bf16.mxu0 %v273_v1  ;;  %263 = vmatprep.mubr.bf16.mxu0 %v280_v4  ;;  %v278_v7 = vld [vmem:[#allocation5 + $0x30] sm:$0xff]   ;;  %v281_v9 = vld [vmem:[#allocation2 + $0x8] sm:$0xff]   ;;  %p327_p2 = scmp.ne.s32.totalorder %s196_s6, %s326_s7  ;;  %p332_p4 = scmp.lt.s32.totalorder %s326_s7, %s326_s7 }
  0x2b   :  { %p333_p5 = por %p332_p4, %p331_p3 }
  0x2c   :  { %250 = vmatpush3.bf16.msra.mxu0 %v273_v1 }
  0x2d   :  { %251 = vmatprep.subr.bf16.mxu0 %v274_v2  ;;  %p334_p6 = pnand %p333_p5, %p327_p2 }
  0x30   :  { %252 = vmatpush3.bf16.msra.mxu0 %v274_v2 }
  0x31   :  { %253 = vmatprep.subr.bf16.mxu0 %v275_v3 }
  0x34   :  { %254 = vmatpush3.bf16.msra.mxu0 %v275_v3 }
  0x35   :  { %255 = vmatprep.subr.bf16.mxu0 %v276_v5 }
  0x38   :  { %256 = vmatpush3.bf16.msra.mxu0 %v276_v5 }
  0x39   :  { %257 = vmatprep.subr.bf16.mxu0 %v277_v6 }
  0x3c   :  { %258 = vmatpush3.bf16.msra.mxu0 %v277_v6 }
  0x3d   :  { %259 = vmatprep.subr.bf16.mxu0 %v278_v7 }
  0x40   :  { %260 = vmatpush3.bf16.msra.mxu0 %v278_v7 }
  0x41   :  { %261 = vmatprep.subr.bf16.mxu0 %v279_v8 }
  0x44   :  { %262 = vmatpush3.bf16.msra.mxu0 %v279_v8 }
  0x47   :  { %264 = vmatmul.mubr.bf16.vlgmr.msra.gmra.mrb[0].mxu0 %v281_v9 }
 0x11a   :  { %v265_v10 = vpop.f32.mrb[0].mxu0 }
 0x11b   :  { %v155_v11 = vpop.f32.mrb[1].mxu0 }
 0x11c   :  { %v266_v12 = vpop.f32.mrb[2].mxu0 }
 0x11d   :  { %v234_v13 = vpack.c.bf16 %v266_v12, %v265_v10  ;;  %v158_v14 = vpop.f32.mrb[3].mxu0 }
 0x11e   :  { %v229_v15 = vpack.c.bf16 %v158_v14, %v155_v11 }
 0x11f   :  { %236 = vst [vmem:[#allocation7 + $0x8] sm:$0xff] %v234_v13  }
 0x120   :  { %230 = vst [vmem:[#allocation7] sm:$0xff] %v229_v15  }
 0x121   :  { %337 = shalt.err (!%p334_p6)
}
 0x122   :  { %s338_s10 = scalar_lea.hbm %s421_s2, 256 }
 0x123   :  { %p339_p7 = scmp.ne.s32.totalorder %s421_s2, %s338_s10  ;;  %p342_p8 = scmp.lt.u32.totalorder %s338_s10, %s421_s2 }
 0x125   :  { %p344_p9 = pnand %p342_p8, %p339_p7 }
 0x127   :  { %347 = shalt.err (!%p344_p9)
}
 0x128   :  { %201 = dma.vmem_to_hbm [thread:$0]  %s196_s6, 256, %s421_s2, [#allocation4], %s355_s19, %s355_s19, %s356_s20  }
 0x129   :  { %352 = dma.done.wait [#allocation4], 256  }
 0x12a   :  { %353 = vsyncadd [#allocation4], 4294967040 }
 0x12b   :  { %205 = vsyncpa [#allocation3], 1 }
 0x12c   :  { %206 = vsyncpa [#allocation6], 1 }
 0x12d   :  { %207 = vsyncpa [#allocation4], 1 }

</bundles_post_ra>
